<compile_context>
chip_gen: v7x
topology: tpu7x:2x2x1
jax: 0.10.0
libtpu: 0.0.40
codegen_flags: <defaults>
</compile_context>

<pallas_src>
import jax
import jax.numpy as jnp
from jax.experimental import pallas as pl
from jax.experimental.pallas import tpu as pltpu

LANE = 128
SUBLANE = 8


def mlp_kernel(x_ref,
               w1_ref, b1_ref,
               w2_ref, b2_ref,
               w3_ref, b3_ref,
               w4_ref, b4_ref,
               w5_ref, b5_ref,
               w6_ref, b6_ref,
               out_ref):
    """Fused MLP on one (TM, input_dim) batch tile.

    x arrives f32 (native HBM dtype) and is cast to bf16 on the VPU (hidden
    under the DMA).  Weights are bf16, biases f32, accumulation f32 on MXU.
    """
    h = x_ref[...].astype(jnp.bfloat16)              # (TM, input_dim)

    def linear_relu(h_bf16, w_ref, b_ref):
        y = jnp.dot(h_bf16, w_ref[...], preferred_element_type=jnp.float32)
        y = jnp.maximum(y + b_ref[...], 0.0)         # (1, out) bias broadcasts
        return y.astype(jnp.bfloat16)

    h = linear_relu(h, w1_ref, b1_ref)
    h = linear_relu(h, w2_ref, b2_ref)
    h = linear_relu(h, w3_ref, b3_ref)
    h = linear_relu(h, w4_ref, b4_ref)
    h = linear_relu(h, w5_ref, b5_ref)

    out = jnp.dot(h, w6_ref[...], preferred_element_type=jnp.float32)
    out_ref[...] = (out + b6_ref[...]).astype(out_ref.dtype)


def _round_up(x, m):
    return ((x + m - 1) // m) * m


def mlp_forward(x_nchw, params, *, tm=2048):
    """x_nchw: (B, C, H, W) float32.  params: list of (W[in,out], b[1,out]) f32."""
    B = x_nchw.shape[0]
    x2d = x_nchw.reshape(B, -1)                      # torch.flatten(x, 1)
    input_dim = x2d.shape[1]
    num_hidden = params[0][0].shape[1]
    num_classes = params[-1][0].shape[1]

    # Lane-dense hidden and output widths (zero padding; exact semantics).
    hid_pad = _round_up(num_hidden, LANE)
    out_pad = _round_up(num_classes, LANE)

    # Pad weights/biases once in the wrapper (tiny), cast weights to bf16,
    # keep biases f32.
    flat_args = []
    n_layers = len(params)
    for i, (w, b) in enumerate(params):
        in_p = w.shape[0] if i == 0 else hid_pad
        out_p = out_pad if i == n_layers - 1 else hid_pad
        w = jnp.pad(w, ((0, in_p - w.shape[0]), (0, out_p - w.shape[1])))
        b = jnp.pad(b, ((0, 0), (0, out_p - b.shape[1])))
        flat_args.append(w.astype(jnp.bfloat16))
        flat_args.append(b.astype(jnp.float32))

    weight_bytes = sum(int(a.size) * a.dtype.itemsize for a in flat_args)

    # Batch tile selection:
    #  - aim for >= 2 grid steps at large B (keeps both v7x TCs fed),
    #  - multiple of the 8-row sublane group,
    #  - fit double-buffered f32 x tile + f32 out tile + resident weights in a
    #    conservative 44 MiB budget (v7x only has 64 MiB physical VMEM).
    target = _round_up(max(1, -(-B // 2)), SUBLANE)
    TM = max(SUBLANE, min(_round_up(tm, SUBLANE), target))

    VMEM_BUDGET = 44 * 1024 * 1024

    def vmem_needed(tm_):
        x_bytes = 2 * tm_ * input_dim * 4            # double-buffered f32 input tiles
        o_bytes = 2 * tm_ * out_pad * 4              # double-buffered f32 output tiles
        return x_bytes + o_bytes + 2 * weight_bytes  # weights counted conservatively

    while TM > SUBLANE and vmem_needed(TM) > VMEM_BUDGET:
        TM = max(SUBLANE, _round_up(TM // 2, SUBLANE))

    # Ragged grid: no jnp.pad pass over x; out-of-range rows in the last block
    # are garbage that is never written back (rows are independent).
    grid = (pl.cdiv(B, TM),)

    def const_spec(arr):
        # Whole array, same block every grid step -> stays VMEM-resident.
        return pl.BlockSpec(arr.shape, lambda i: (0, 0))

    in_specs = [pl.BlockSpec((TM, input_dim), lambda i: (i, 0))]
    in_specs += [const_spec(a) for a in flat_args]

    # Explicit scoped-VMEM limit: covers v5e's 16 MiB default when TM is large,
    # capped at 48 MiB so a v6e-tuned config stays safe on v7x (64 MiB phys).
    vmem_limit = int(min(max(vmem_needed(TM) + (4 << 20), 32 << 20), 48 << 20))

    out_padded = pl.pallas_call(
        mlp_kernel,
        out_shape=jax.ShapeDtypeStruct((B, out_pad), jnp.float32),
        grid=grid,
        in_specs=in_specs,
        out_specs=pl.BlockSpec((TM, out_pad), lambda i: (i, 0)),
        compiler_params=pltpu.CompilerParams(
            dimension_semantics=("parallel",),
            vmem_limit_bytes=vmem_limit,
        ),
    )(x2d, *flat_args)

    # Only the padded lanes need slicing; rows are already exactly B.
    return out_padded[:, :num_classes]


def init_params(key, input_dim, num_hidden, num_classes):
    """nn.Linear-style init (uniform +-1/sqrt(fan_in)).

    Weights stored transposed: (in_features, out_features).
    Biases stored as (1, out_features).
    """
    dims = [(input_dim, num_hidden),
            (num_hidden, num_hidden),
            (num_hidden, num_hidden),
            (num_hidden, num_hidden),
            (num_hidden, num_hidden),
            (num_hidden, num_classes)]
    params = []
    for (fan_in, fan_out) in dims:
        key, kw, kb = jax.random.split(key, 3)
        bound = 1.0 / jnp.sqrt(fan_in)
        w = jax.random.uniform(kw, (fan_in, fan_out), jnp.float32, -bound, bound)
        b = jax.random.uniform(kb, (1, fan_out), jnp.float32, -bound, bound)
        params.append((w, b))
    return params


def reference_forward(x_nchw, params):
    """Pure-JAX f32 reference for correctness checking."""
    h = x_nchw.reshape(x_nchw.shape[0], -1)
    for i, (w, b) in enumerate(params):
        h = h @ w + b
        if i < len(params) - 1:
            h = jnp.maximum(h, 0.0)
    return h


if __name__ == "__main__":
    key = jax.random.PRNGKey(0)
    key, kx, kp, kx2 = jax.random.split(key, 4)

    B, C, H, W = 2, 4, 16, 16          # x: (2, 4, 16, 16) NCHW
    input_dim = C * H * W              # 1024 after flatten
    num_hidden = 32
    num_classes = 10

    x = jax.random.normal(kx, (B, C, H, W), jnp.float32)
    params = init_params(kp, input_dim, num_hidden, num_classes)

    out = jax.block_until_ready(mlp_forward(x, params))
    ref = reference_forward(x, params)
    assert out.shape == (B, num_classes)
    # bf16 weights / bf16-cast activations with f32 accumulation -> relaxed tol.
    assert jnp.allclose(out, ref, atol=3e-2, rtol=3e-2), "mismatch vs reference (B=2)"

    # Exercise the multi-step, ragged-grid path: B >> TM and B % TM != 0.
    B2 = 300
    x2 = jax.random.normal(kx2, (B2, C, H, W), jnp.float32)
    out2 = jax.block_until_ready(mlp_forward(x2, params, tm=128))
    ref2 = reference_forward(x2, params)
    assert out2.shape == (B2, num_classes)
    assert jnp.allclose(out2, ref2, atol=3e-2, rtol=3e-2), "mismatch vs reference (B=300)"

    print("KERNEL_OK")
</pallas_src>

<mosaic_0001>
module attributes {stable_mosaic.version = 11 : i64} {
  func.func @mlp_kernel(%arg0: i32, %arg1: memref<8x1024xf32, #tpu.memory_space<vmem>>, %arg2: memref<1024x128xbf16, #tpu.memory_space<vmem>>, %arg3: memref<1x128xf32, #tpu.memory_space<vmem>>, %arg4: memref<128x128xbf16, #tpu.memory_space<vmem>>, %arg5: memref<1x128xf32, #tpu.memory_space<vmem>>, %arg6: memref<128x128xbf16, #tpu.memory_space<vmem>>, %arg7: memref<1x128xf32, #tpu.memory_space<vmem>>, %arg8: memref<128x128xbf16, #tpu.memory_space<vmem>>, %arg9: memref<1x128xf32, #tpu.memory_space<vmem>>, %arg10: memref<128x128xbf16, #tpu.memory_space<vmem>>, %arg11: memref<1x128xf32, #tpu.memory_space<vmem>>, %arg12: memref<128x128xbf16, #tpu.memory_space<vmem>>, %arg13: memref<1x128xf32, #tpu.memory_space<vmem>>, %arg14: memref<8x128xf32, #tpu.memory_space<vmem>>) attributes {dimension_semantics = [#tpu.dimension_semantics<parallel>], iteration_bounds = array<i64: 1>, scalar_prefetch = 0 : i64, scratch_operands = 0 : i64, tpu.core_type = #tpu.core_type<tc>, window_params = [{transform_indices = @transform_0, window_bounds = array<i64: 8, 1024>}, {pipeline_mode = #tpu.pipeline_mode<synchronous>, transform_indices = @transform_1, window_bounds = array<i64: 1024, 128>}, {pipeline_mode = #tpu.pipeline_mode<synchronous>, transform_indices = @transform_2, window_bounds = array<i64: 1, 128>}, {pipeline_mode = #tpu.pipeline_mode<synchronous>, transform_indices = @transform_3, window_bounds = array<i64: 128, 128>}, {pipeline_mode = #tpu.pipeline_mode<synchronous>, transform_indices = @transform_4, window_bounds = array<i64: 1, 128>}, {pipeline_mode = #tpu.pipeline_mode<synchronous>, transform_indices = @transform_5, window_bounds = array<i64: 128, 128>}, {pipeline_mode = #tpu.pipeline_mode<synchronous>, transform_indices = @transform_6, window_bounds = array<i64: 1, 128>}, {pipeline_mode = #tpu.pipeline_mode<synchronous>, transform_indices = @transform_7, window_bounds = array<i64: 128, 128>}, {pipeline_mode = #tpu.pipeline_mode<synchronous>, transform_indices = @transform_8, window_bounds = array<i64: 1, 128>}, {pipeline_mode = #tpu.pipeline_mode<synchronous>, transform_indices = @transform_9, window_bounds = array<i64: 128, 128>}, {pipeline_mode = #tpu.pipeline_mode<synchronous>, transform_indices = @transform_10, window_bounds = array<i64: 1, 128>}, {pipeline_mode = #tpu.pipeline_mode<synchronous>, transform_indices = @transform_11, window_bounds = array<i64: 128, 128>}, {pipeline_mode = #tpu.pipeline_mode<synchronous>, transform_indices = @transform_12, window_bounds = array<i64: 1, 128>}, {transform_indices = @transform_13, window_bounds = array<i64: 8, 128>}]} {
    %c0 = arith.constant 0 : index
    %c0_0 = arith.constant 0 : index
    %0 = vector.load %arg1[%c0, %c0_0] : memref<8x1024xf32, #tpu.memory_space<vmem>>, vector<8x1024xf32>
    %1 = arith.truncf %0 : vector<8x1024xf32> to vector<8x1024xbf16>
    %c0_1 = arith.constant 0 : index
    %c0_2 = arith.constant 0 : index
    %2 = vector.load %arg2[%c0_1, %c0_2] : memref<1024x128xbf16, #tpu.memory_space<vmem>>, vector<1024x128xbf16>
    %cst = arith.constant dense<0.000000e+00> : vector<8x128xf32>
    %3 = tpu.matmul %1, %2, %cst {dimension_numbers = #tpu.dot_dimension_numbers<[1], [0], [0], [1], [0, 0, 1, 1], [], []>} : vector<8x1024xbf16>, vector<1024x128xbf16>, vector<8x128xf32> -> vector<8x128xf32>
    %c0_3 = arith.constant 0 : index
    %c0_4 = arith.constant 0 : index
    %4 = vector.load %arg3[%c0_3, %c0_4] : memref<1x128xf32, #tpu.memory_space<vmem>>, vector<1x128xf32>
    %5 = vector.broadcast %4 : vector<1x128xf32> to vector<8x128xf32>
    %6 = arith.addf %3, %5 : vector<8x128xf32>
    %cst_5 = arith.constant 0.000000e+00 : f32
    %7 = vector.broadcast %cst_5 : f32 to vector<8x128xf32>
    %8 = arith.maximumf %6, %7 : vector<8x128xf32>
    %9 = arith.truncf %8 : vector<8x128xf32> to vector<8x128xbf16>
    %c0_6 = arith.constant 0 : index
    %c0_7 = arith.constant 0 : index
    %10 = vector.load %arg4[%c0_6, %c0_7] : memref<128x128xbf16, #tpu.memory_space<vmem>>, vector<128x128xbf16>
    %cst_8 = arith.constant dense<0.000000e+00> : vector<8x128xf32>
    %11 = tpu.matmul %9, %10, %cst_8 {dimension_numbers = #tpu.dot_dimension_numbers<[1], [0], [0], [1], [0, 0, 1, 1], [], []>} : vector<8x128xbf16>, vector<128x128xbf16>, vector<8x128xf32> -> vector<8x128xf32>
    %c0_9 = arith.constant 0 : index
    %c0_10 = arith.constant 0 : index
    %12 = vector.load %arg5[%c0_9, %c0_10] : memref<1x128xf32, #tpu.memory_space<vmem>>, vector<1x128xf32>
    %13 = vector.broadcast %12 : vector<1x128xf32> to vector<8x128xf32>
    %14 = arith.addf %11, %13 : vector<8x128xf32>
    %cst_11 = arith.constant 0.000000e+00 : f32
    %15 = vector.broadcast %cst_11 : f32 to vector<8x128xf32>
    %16 = arith.maximumf %14, %15 : vector<8x128xf32>
    %17 = arith.truncf %16 : vector<8x128xf32> to vector<8x128xbf16>
    %c0_12 = arith.constant 0 : index
    %c0_13 = arith.constant 0 : index
    %18 = vector.load %arg6[%c0_12, %c0_13] : memref<128x128xbf16, #tpu.memory_space<vmem>>, vector<128x128xbf16>
    %cst_14 = arith.constant dense<0.000000e+00> : vector<8x128xf32>
    %19 = tpu.matmul %17, %18, %cst_14 {dimension_numbers = #tpu.dot_dimension_numbers<[1], [0], [0], [1], [0, 0, 1, 1], [], []>} : vector<8x128xbf16>, vector<128x128xbf16>, vector<8x128xf32> -> vector<8x128xf32>
    %c0_15 = arith.constant 0 : index
    %c0_16 = arith.constant 0 : index
    %20 = vector.load %arg7[%c0_15, %c0_16] : memref<1x128xf32, #tpu.memory_space<vmem>>, vector<1x128xf32>
    %21 = vector.broadcast %20 : vector<1x128xf32> to vector<8x128xf32>
    %22 = arith.addf %19, %21 : vector<8x128xf32>
    %cst_17 = arith.constant 0.000000e+00 : f32
    %23 = vector.broadcast %cst_17 : f32 to vector<8x128xf32>
    %24 = arith.maximumf %22, %23 : vector<8x128xf32>
    %25 = arith.truncf %24 : vector<8x128xf32> to vector<8x128xbf16>
    %c0_18 = arith.constant 0 : index
    %c0_19 = arith.constant 0 : index
    %26 = vector.load %arg8[%c0_18, %c0_19] : memref<128x128xbf16, #tpu.memory_space<vmem>>, vector<128x128xbf16>
    %cst_20 = arith.constant dense<0.000000e+00> : vector<8x128xf32>
    %27 = tpu.matmul %25, %26, %cst_20 {dimension_numbers = #tpu.dot_dimension_numbers<[1], [0], [0], [1], [0, 0, 1, 1], [], []>} : vector<8x128xbf16>, vector<128x128xbf16>, vector<8x128xf32> -> vector<8x128xf32>
    %c0_21 = arith.constant 0 : index
    %c0_22 = arith.constant 0 : index
    %28 = vector.load %arg9[%c0_21, %c0_22] : memref<1x128xf32, #tpu.memory_space<vmem>>, vector<1x128xf32>
    %29 = vector.broadcast %28 : vector<1x128xf32> to vector<8x128xf32>
    %30 = arith.addf %27, %29 : vector<8x128xf32>
    %cst_23 = arith.constant 0.000000e+00 : f32
    %31 = vector.broadcast %cst_23 : f32 to vector<8x128xf32>
    %32 = arith.maximumf %30, %31 : vector<8x128xf32>
    %33 = arith.truncf %32 : vector<8x128xf32> to vector<8x128xbf16>
    %c0_24 = arith.constant 0 : index
    %c0_25 = arith.constant 0 : index
    %34 = vector.load %arg10[%c0_24, %c0_25] : memref<128x128xbf16, #tpu.memory_space<vmem>>, vector<128x128xbf16>
    %cst_26 = arith.constant dense<0.000000e+00> : vector<8x128xf32>
    %35 = tpu.matmul %33, %34, %cst_26 {dimension_numbers = #tpu.dot_dimension_numbers<[1], [0], [0], [1], [0, 0, 1, 1], [], []>} : vector<8x128xbf16>, vector<128x128xbf16>, vector<8x128xf32> -> vector<8x128xf32>
    %c0_27 = arith.constant 0 : index
    %c0_28 = arith.constant 0 : index
    %36 = vector.load %arg11[%c0_27, %c0_28] : memref<1x128xf32, #tpu.memory_space<vmem>>, vector<1x128xf32>
    %37 = vector.broadcast %36 : vector<1x128xf32> to vector<8x128xf32>
    %38 = arith.addf %35, %37 : vector<8x128xf32>
    %cst_29 = arith.constant 0.000000e+00 : f32
    %39 = vector.broadcast %cst_29 : f32 to vector<8x128xf32>
    %40 = arith.maximumf %38, %39 : vector<8x128xf32>
    %41 = arith.truncf %40 : vector<8x128xf32> to vector<8x128xbf16>
    %c0_30 = arith.constant 0 : index
    %c0_31 = arith.constant 0 : index
    %42 = vector.load %arg12[%c0_30, %c0_31] : memref<128x128xbf16, #tpu.memory_space<vmem>>, vector<128x128xbf16>
    %cst_32 = arith.constant dense<0.000000e+00> : vector<8x128xf32>
    %43 = tpu.matmul %41, %42, %cst_32 {dimension_numbers = #tpu.dot_dimension_numbers<[1], [0], [0], [1], [0, 0, 1, 1], [], []>} : vector<8x128xbf16>, vector<128x128xbf16>, vector<8x128xf32> -> vector<8x128xf32>
    %c0_33 = arith.constant 0 : index
    %c0_34 = arith.constant 0 : index
    %44 = vector.load %arg13[%c0_33, %c0_34] : memref<1x128xf32, #tpu.memory_space<vmem>>, vector<1x128xf32>
    %45 = vector.broadcast %44 : vector<1x128xf32> to vector<8x128xf32>
    %46 = arith.addf %43, %45 : vector<8x128xf32>
    %c0_35 = arith.constant 0 : index
    %c0_36 = arith.constant 0 : index
    %47 = vector.load %arg14[%c0_35, %c0_36] : memref<8x128xf32, #tpu.memory_space<vmem>>, vector<8x128xf32>
    tpu.vector_store %arg14[%c0_35, %c0_36], %46 {strides = array<i32>} : memref<8x128xf32, #tpu.memory_space<vmem>>, vector<8x128xf32>,
    return
  }
  func.func @transform_0(%arg0: i32) -> (i32, i32) {
    %c0_i32 = arith.constant 0 : i32
    %c0_i32_0 = arith.constant 0 : i32
    return %arg0, %c0_i32 : i32, i32
  }
  func.func @transform_1(%arg0: i32) -> (i32, i32) {
    %c0_i32 = arith.constant 0 : i32
    %c0_i32_0 = arith.constant 0 : i32
    %c0_i32_1 = arith.constant 0 : i32
    return %c0_i32, %c0_i32_0 : i32, i32
  }
  func.func @transform_2(%arg0: i32) -> (i32, i32) {
    %c0_i32 = arith.constant 0 : i32
    %c0_i32_0 = arith.constant 0 : i32
    %c0_i32_1 = arith.constant 0 : i32
    return %c0_i32, %c0_i32_0 : i32, i32
  }
  func.func @transform_3(%arg0: i32) -> (i32, i32) {
    %c0_i32 = arith.constant 0 : i32
    %c0_i32_0 = arith.constant 0 : i32
    %c0_i32_1 = arith.constant 0 : i32
    return %c0_i32, %c0_i32_0 : i32, i32
  }
  func.func @transform_4(%arg0: i32) -> (i32, i32) {
    %c0_i32 = arith.constant 0 : i32
    %c0_i32_0 = arith.constant 0 : i32
    %c0_i32_1 = arith.constant 0 : i32
    return %c0_i32, %c0_i32_0 : i32, i32
  }
  func.func @transform_5(%arg0: i32) -> (i32, i32) {
    %c0_i32 = arith.constant 0 : i32
    %c0_i32_0 = arith.constant 0 : i32
    %c0_i32_1 = arith.constant 0 : i32
    return %c0_i32, %c0_i32_0 : i32, i32
  }
  func.func @transform_6(%arg0: i32) -> (i32, i32) {
    %c0_i32 = arith.constant 0 : i32
    %c0_i32_0 = arith.constant 0 : i32
    %c0_i32_1 = arith.constant 0 : i32
    return %c0_i32, %c0_i32_0 : i32, i32
  }
  func.func @transform_7(%arg0: i32) -> (i32, i32) {
    %c0_i32 = arith.constant 0 : i32
    %c0_i32_0 = arith.constant 0 : i32
    %c0_i32_1 = arith.constant 0 : i32
    return %c0_i32, %c0_i32_0 : i32, i32
  }
  func.func @transform_8(%arg0: i32) -> (i32, i32) {
    %c0_i32 = arith.constant 0 : i32
    %c0_i32_0 = arith.constant 0 : i32
    %c0_i32_1 = arith.constant 0 : i32
    return %c0_i32, %c0_i32_0 : i32, i32
  }
  func.func @transform_9(%arg0: i32) -> (i32, i32) {
    %c0_i32 = arith.constant 0 : i32
    %c0_i32_0 = arith.constant 0 : i32
    %c0_i32_1 = arith.constant 0 : i32
    return %c0_i32, %c0_i32_0 : i32, i32
  }
  func.func @transform_10(%arg0: i32) -> (i32, i32) {
    %c0_i32 = arith.constant 0 : i32
    %c0_i32_0 = arith.constant 0 : i32
    %c0_i32_1 = arith.constant 0 : i32
    return %c0_i32, %c0_i32_0 : i32, i32
  }
  func.func @transform_11(%arg0: i32) -> (i32, i32) {
    %c0_i32 = arith.constant 0 : i32
    %c0_i32_0 = arith.constant 0 : i32
    %c0_i32_1 = arith.constant 0 : i32
    return %c0_i32, %c0_i32_0 : i32, i32
  }
  func.func @transform_12(%arg0: i32) -> (i32, i32) {
    %c0_i32 = arith.constant 0 : i32
    %c0_i32_0 = arith.constant 0 : i32
    %c0_i32_1 = arith.constant 0 : i32
    return %c0_i32, %c0_i32_0 : i32, i32
  }
  func.func @transform_13(%arg0: i32) -> (i32, i32) {
    %c0_i32 = arith.constant 0 : i32
    %c0_i32_0 = arith.constant 0 : i32
    return %arg0, %c0_i32 : i32, i32
  }
}

</mosaic_0001>

<bundles_post_ra>
// kernel: tpu_custom_call.1
= control target key start
LH: loop header
LB: loop body
LE: loop exit
PB: predicated region body
PF: predicated region fallthrough
CT: control target
= control target key end

     0   :  { %18 = vsyncpa [#allocation3], 0  ;;  %s2458_s0 = inlined_call_operand.hbm [shape: f32[2,1024], index: 0, kind: input, shape index: {}]   ;;  %s2459_s1 = inlined_call_operand.hbm [shape: bf16[1024,128], index: 1, kind: input, shape index: {}]   ;;  %s2460_s2 = inlined_call_operand.vmem [shape: f32[1,128], index: 2, kind: input, shape index: {}]   ;;  %s2461_s3 = inlined_call_operand.hbm [shape: bf16[128,128], index: 3, kind: input, shape index: {}]   ;;  %s2462_s4 = inlined_call_operand.vmem [shape: f32[1,128], index: 4, kind: input, shape index: {}]   ;;  %s2463_s5 = inlined_call_operand.hbm [shape: bf16[128,128], index: 5, kind: input, shape index: {}]   ;;  %s2464_s6 = inlined_call_operand.vmem [shape: f32[1,128], index: 6, kind: input, shape index: {}]   ;;  %s2465_s7 = inlined_call_operand.hbm [shape: bf16[128,128], index: 7, kind: input, shape index: {}]   ;;  %s2466_s8 = inlined_call_operand.vmem [shape: f32[1,128], index: 8, kind: input, shape index: {}]   ;;  %s2467_s9 = inlined_call_operand.hbm [shape: bf16[128,128], index: 9, kind: input, shape index: {}]   ;;  %s2468_s10 = inlined_call_operand.vmem [shape: f32[1,128], index: 10, kind: input, shape index: {}]   ;;  %s2469_s11 = inlined_call_operand.hbm [shape: bf16[128,128], index: 11, kind: input, shape index: {}]   ;;  %s2470_s12 = inlined_call_operand.vmem [shape: f32[1,128], index: 12, kind: input, shape index: {}]   ;;  %s2471_s13 = inlined_call_operand.hbm [shape: f32[2,128], index: 13, kind: output, shape index: {}]  }
   0x1   :  { %19 = vsyncpa [#allocation6], 0 }
   0x2   :  { %20 = vsyncpa [#allocation9], 0 }
   0x3   :  { %21 = vsyncpa [#allocation12], 0 }
   0x4   :  { %22 = vsyncpa [#allocation4], 0 }
   0x5   :  { %27 = vsyncadd [#allocation3], 768  ;;  %s2172_s25 = smov [#allocation5]   ;;  %s1986_s29 = scalar_lea.hbm %s2459_s1, 8192 }
   0x6   :  { %s40_s26 = sshll.u32 %s2172_s25, 4  ;;  %p1987_p0 = scmp.ne.s32.totalorder %s2459_s1, %s1986_s29  ;;  %s41_s26 = int_to_ptr.vmem [resolvable:$true] %s40_s26 }
   0x7   :  { %p1990_p1 = scmp.lt.u32.totalorder %s1986_s29, %s2459_s1 }
   0x9   :  { %p1992_p2 = pnand %p1990_p1, %p1987_p0 }
   0xb   :  { %1995 = shalt.err (!%p1992_p2)
}
   0xc   :  { %s1996_s17 = scalar_lea.vmem %s41_s26, 8192  ;;  %p2001_p4 = scmp.lt.s32.totalorder %s41_s26, %s41_s26 }
   0xd   :  { %p1997_p3 = scmp.ne.s32.totalorder %s41_s26, %s1996_s17  ;;  %p2002_p5 = scmp.lt.s32.totalorder %s1996_s17, %s1996_s17 }
   0xf   :  { %p2003_p6 = por %p2002_p5, %p2001_p4 }
  0x11   :  { %p2004_p7 = pnand %p2003_p6, %p1997_p3 }
  0x13   :  { %2007 = shalt.err (!%p2004_p7)
}
  0x14   :  { %s2173_s18 = smov 64   ;;  %s2174_s19 = smov 4  }
  0x15   :  { %46 = dma.hbm_to_vmem [thread:$0]  %s2459_s1, 8192, %s41_s26, [#allocation6], %s2173_s18, %s2173_s18, %s2174_s19  }
  0x16   :  { %s2175_s22 = smov [#allocation8]   ;;  %s2176_s24 = smov [#allocation11]  }
  0x17   :  { %s68_s23 = sshll.u32 %s2175_s22, 4  ;;  %s96_s25 = sshll.u32 %s2176_s24, 4  ;;  %s69_s23 = int_to_ptr.vmem [resolvable:$true] %s68_s23  ;;  %s97_s25 = int_to_ptr.vmem [resolvable:$true] %s96_s25 }
  0x18   :  { %s2008_s29 = scalar_lea.hbm %s2463_s5, 1024 }
  0x19   :  { %p2009_p8 = scmp.ne.s32.totalorder %s2463_s5, %s2008_s29  ;;  %p2012_p9 = scmp.lt.u32.totalorder %s2008_s29, %s2463_s5 }
  0x1b   :  { %p2014_p10 = pnand %p2012_p9, %p2009_p8 }
  0x1d   :  { %2017 = shalt.err (!%p2014_p10)
}
  0x1e   :  { %s2018_s1 = scalar_lea.vmem %s69_s23, 1024  ;;  %p2023_p12 = scmp.lt.s32.totalorder %s69_s23, %s69_s23 }
  0x1f   :  { %p2019_p11 = scmp.ne.s32.totalorder %s69_s23, %s2018_s1  ;;  %p2024_p13 = scmp.lt.s32.totalorder %s2018_s1, %s2018_s1 }
  0x21   :  { %p2025_p0 = por %p2024_p13, %p2023_p12 }
  0x23   :  { %p2026_p1 = pnand %p2025_p0, %p2019_p11 }
  0x25   :  { %2029 = shalt.err (!%p2026_p1)
}
  0x26   :  { %74 = dma.hbm_to_vmem [thread:$0]  %s2463_s5, 1024, %s69_s23, [#allocation9], %s2173_s18, %s2173_s18, %s2174_s19  }
  0x27   :  { %s2030_s22 = scalar_lea.hbm %s2467_s9, 1024 }
  0x28   :  { %p2031_p2 = scmp.ne.s32.totalorder %s2467_s9, %s2030_s22  ;;  %p2034_p3 = scmp.lt.u32.totalorder %s2030_s22, %s2467_s9 }
  0x2a   :  { %p2036_p4 = pnand %p2034_p3, %p2031_p2 }
  0x2c   :  { %2039 = shalt.err (!%p2036_p4)
}
  0x2d   :  { %s2040_s30 = scalar_lea.vmem %s97_s25, 1024  ;;  %p2045_p6 = scmp.lt.s32.totalorder %s97_s25, %s97_s25 }
  0x2e   :  { %p2041_p5 = scmp.ne.s32.totalorder %s97_s25, %s2040_s30  ;;  %p2046_p7 = scmp.lt.s32.totalorder %s2040_s30, %s2040_s30 }
  0x30   :  { %p2047_p8 = por %p2046_p7, %p2045_p6 }
  0x32   :  { %p2048_p9 = pnand %p2047_p8, %p2041_p5 }
  0x34   :  { %2051 = shalt.err (!%p2048_p9)
}
  0x35   :  { %102 = dma.hbm_to_vmem [thread:$0]  %s2467_s9, 1024, %s97_s25, [#allocation12], %s2173_s18, %s2173_s18, %s2174_s19  }
  0x36   :  { %s2177_s14 = smov [#allocation2]   ;;  %s2052_s26 = scalar_lea.hbm %s2458_s0, 256 }
  0x37   :  { %s28_s15 = sshll.u32 %s2177_s14, 4  ;;  %p2053_p10 = scmp.ne.s32.totalorder %s2458_s0, %s2052_s26  ;;  %s29_s15 = int_to_ptr.vmem [resolvable:$true] %s28_s15 }
  0x38   :  { %p2056_p11 = scmp.lt.u32.totalorder %s2052_s26, %s2458_s0 }
  0x3a   :  { %p2058_p12 = pnand %p2056_p11, %p2053_p10 }
  0x3c   :  { %2061 = shalt.err (!%p2058_p12)
}
  0x3d   :  { %s2062_s24 = scalar_lea.vmem %s29_s15, 256  ;;  %s2066_s9 = scalar_lea.vmem %s29_s15, 1024 }
  0x3e   :  { %p2063_p13 = scmp.ne.s32.totalorder %s29_s15, %s2062_s24  ;;  %p2067_p0 = scmp.lt.s32.totalorder %s29_s15, %s29_s15 }
  0x3f   :  { %p2068_p1 = scmp.lt.s32.totalorder %s2066_s9, %s2062_s24 }
  0x41   :  { %p2069_p2 = por %p2068_p1, %p2067_p0 }
  0x43   :  { %p2070_p3 = pnand %p2069_p2, %p2063_p13 }
  0x45   :  { %2073 = shalt.err (!%p2070_p3)
}
  0x46   :  { %s2178_s25 = smov 256   ;;  %s2179_s27 = smov 16  }
  0x47   :  { %34 = dma.hbm_to_vmem [thread:$0]  %s2458_s0, 256, %s29_s15, [#allocation3], %s2178_s25, %s2178_s25, %s2179_s27  }
  0x48   :  { %s2180_s30 = smov [#allocation7]   ;;  %s2181_s23 = smov [#allocation10]  }
  0x49   :  { %s54_s5 = sshll.u32 %s2180_s30, 4  ;;  %s82_s14 = sshll.u32 %s2181_s23, 4  ;;  %s55_s5 = int_to_ptr.vmem [resolvable:$true] %s54_s5  ;;  %s2316_s14 = int_to_ptr.vmem [resolvable:$true] %s82_s14 }
  0x4a   :  { %s2074_s26 = scalar_lea.hbm %s2461_s3, 1024 }
  0x4b   :  { %p2075_p4 = scmp.ne.s32.totalorder %s2461_s3, %s2074_s26  ;;  %p2078_p5 = scmp.lt.u32.totalorder %s2074_s26, %s2461_s3 }
  0x4d   :  { %p2080_p6 = pnand %p2078_p5, %p2075_p4 }
  0x4f   :  { %2083 = shalt.err (!%p2080_p6)
}
  0x50   :  { %s2084_s0 = scalar_lea.vmem %s55_s5, 1024  ;;  %p2089_p8 = scmp.lt.s32.totalorder %s55_s5, %s55_s5 }
  0x51   :  { %p2085_p7 = scmp.ne.s32.totalorder %s55_s5, %s2084_s0  ;;  %p2090_p9 = scmp.lt.s32.totalorder %s2084_s0, %s2084_s0 }
  0x53   :  { %p2091_p10 = por %p2090_p9, %p2089_p8 }
  0x55   :  { %p2092_p11 = pnand %p2091_p10, %p2085_p7 }
  0x57   :  { %2095 = shalt.err (!%p2092_p11)
}
  0x58   :  { %60 = dma.hbm_to_vmem [thread:$0]  %s2461_s3, 1024, %s55_s5, [#allocation6], %s2173_s18, %s2173_s18, %s2174_s19  }
  0x59   :  { %s2096_s27 = scalar_lea.hbm %s2465_s7, 1024 }
  0x5a   :  { %p2097_p12 = scmp.ne.s32.totalorder %s2465_s7, %s2096_s27  ;;  %p2100_p13 = scmp.lt.u32.totalorder %s2096_s27, %s2465_s7 }
  0x5c   :  { %p2102_p0 = pnand %p2100_p13, %p2097_p12 }
  0x5e   :  { %2105 = shalt.err (!%p2102_p0)
}
  0x5f   :  { %s2106_s16 = scalar_lea.vmem %s2316_s14, 1024  ;;  %p2111_p2 = scmp.lt.s32.totalorder %s2316_s14, %s2316_s14 }
  0x60   :  { %p2107_p1 = scmp.ne.s32.totalorder %s2316_s14, %s2106_s16  ;;  %p2112_p3 = scmp.lt.s32.totalorder %s2106_s16, %s2106_s16 }
  0x62   :  { %p2113_p4 = por %p2112_p3, %p2111_p2 }
  0x64   :  { %p2114_p5 = pnand %p2113_p4, %p2107_p1 }
  0x66   :  { %2117 = shalt.err (!%p2114_p5)
}
  0x67   :  { %88 = dma.hbm_to_vmem [thread:$0]  %s2465_s7, 1024, %s2316_s14, [#allocation9], %s2173_s18, %s2173_s18, %s2174_s19  }
  0x68   :  { %s2182_s1 = smov [#allocation13]   ;;  %s2118_s21 = scalar_lea.hbm %s2469_s11, 1024 }
  0x69   :  { %s110_s26 = sshll.u32 %s2182_s1, 4  ;;  %p2119_p6 = scmp.ne.s32.totalorder %s2469_s11, %s2118_s21  ;;  %s111_s26 = int_to_ptr.vmem [resolvable:$true] %s110_s26 }
  0x6a   :  { %p2122_p7 = scmp.lt.u32.totalorder %s2118_s21, %s2469_s11 }
  0x6c   :  { %p2124_p8 = pnand %p2122_p7, %p2119_p6 }
  0x6e   :  { %2127 = shalt.err (!%p2124_p8)
}
  0x6f   :  { %s2128_s9 = scalar_lea.vmem %s111_s26, 1024  ;;  %p2133_p10 = scmp.lt.s32.totalorder %s111_s26, %s111_s26 }
  0x70   :  { %p2129_p9 = scmp.ne.s32.totalorder %s111_s26, %s2128_s9  ;;  %p2134_p11 = scmp.lt.s32.totalorder %s2128_s9, %s2128_s9 }
  0x72   :  { %p2135_p12 = por %p2134_p11, %p2133_p10 }
  0x74   :  { %p2136_p13 = pnand %p2135_p12, %p2129_p9 }
  0x76   :  { %2139 = shalt.err (!%p2136_p13)
}
  0x77   :  { %116 = dma.hbm_to_vmem [thread:$0]  %s2469_s11, 1024, %s111_s26, [#allocation12], %s2173_s18, %s2173_s18, %s2174_s19  }
  0x78   :  { %2162 = dma.done.wait [#allocation3], 1024  }
  0x79   :  { %2163 = vsyncadd [#allocation3], 4294966272 }
  0x7a   :  { %2164 = dma.done.wait [#allocation6], 9216  }
  0x7b   :  { %2165 = vsyncadd [#allocation6], 4294958080 }
  0x7c   :  { %2166 = dma.done.wait [#allocation9], 2048  }
  0x7d   :  { %2167 = vsyncadd [#allocation9], 4294965248 }
  0x7e   :  { %2168 = dma.done.wait [#allocation12], 2048  }
  0x7f   :  { %2169 = vsyncadd [#allocation12], 4294965248  ;;  %v1870_v0 = vld [vmem:[#allocation5 + $0x40] sm:$0xff]   ;;  %v1874_v4 = vld [vmem:[#allocation5 + $0x48] sm:$0xff]   ;;  %v2183_v24 = vmov 1983009808   ;;  %v164_v26 = vlaneseq }
  0x80   :  { %v1871_v1 = vld [vmem:[#allocation5 + $0xc0] sm:$0xff]   ;;  %1620 = vmatprep.subr.bf16.mxu0 %v1870_v0  ;;  %v1875_v5 = vld [vmem:[#allocation5 + $0xc8] sm:$0xff]   ;;  %v1878_v8 = vld [vmem:[#allocation5 + $0x50] sm:$0xff]   ;;  %v162_v25 = vunpack.c.l.s4 %v2183_v24  ;;  %vm2185_vm0 = vmmov 0  }
  0x81   :  { %v1872_v2 = vld [vmem:[#allocation5] sm:$0xff]   ;;  %1642 = vmatprep.subr.bf16.mxu1 %v1871_v1  ;;  %v1876_v6 = vld [vmem:[#allocation5 + $0x8] sm:$0xff]   ;;  %v1879_v9 = vld [vmem:[#allocation5 + $0xd0] sm:$0xff]   ;;  %v165_v32 = vshrl.u32 %v164_v26, 7 }
  0x82   :  { %v1873_v3 = vld [vmem:[#allocation5 + $0x80] sm:$0xff]   ;;  %1621 = vmatpush3.bf16.msra.mxu0 %v1872_v2  ;;  %v1877_v7 = vld [vmem:[#allocation5 + $0x88] sm:$0xff]   ;;  %v1880_v10 = vld [vmem:[#allocation5 + $0x10] sm:$0xff]   ;;  %v163_v31 = vunpack.c.0.s8 %v162_v25 }
  0x83   :  { %1643 = vmatpush3.bf16.msra.mxu1 %v1873_v3  ;;  %1622 = vmatprep.subr.bf16.mxu0 %v1874_v4  ;;  %v1881_v11 = vld [vmem:[#allocation5 + $0x90] sm:$0xff]   ;;  %v1882_v12 = vld [vmem:[#allocation5 + $0x58] sm:$0xff]   ;;  %v1886_v16 = vld [vmem:[#allocation5 + $0x60] sm:$0xff]  }
  0x84   :  { %1644 = vmatprep.subr.bf16.mxu1 %v1875_v5  ;;  %v1883_v13 = vld [vmem:[#allocation5 + $0xd8] sm:$0xff]   ;;  %v1887_v17 = vld [vmem:[#allocation5 + $0xe0] sm:$0xff]   ;;  %v1890_v20 = vld [vmem:[#allocation5 + $0x68] sm:$0xff]   ;;  %v2368_v37 = vsub.s32 %v163_v31, %v165_v32 }
  0x85   :  { %v1884_v14 = vld [vmem:[#allocation5 + $0x18] sm:$0xff]   ;;  %v1888_v18 = vld [vmem:[#allocation5 + $0x20] sm:$0xff]   ;;  %v1891_v21 = vld [vmem:[#allocation5 + $0xe8] sm:$0xff]  }
  0x86   :  { %1623 = vmatpush3.bf16.msra.mxu0 %v1876_v6  ;;  %v1885_v15 = vld [vmem:[#allocation5 + $0x98] sm:$0xff]   ;;  %v1889_v19 = vld [vmem:[#allocation5 + $0xa0] sm:$0xff]   ;;  %v1892_v22 = vld [vmem:[#allocation5 + $0x28] sm:$0xff]  }
  0x87   :  { %1645 = vmatpush3.bf16.msra.mxu1 %v1877_v7  ;;  %1624 = vmatprep.subr.bf16.mxu0 %v1878_v8  ;;  %v1893_v23 = vld [vmem:[#allocation5 + $0xa8] sm:$0xff]   ;;  %v1894_v27 = vld [vmem:[#allocation5 + $0x70] sm:$0xff]   ;;  %v1898_v33 = vld [vmem:[#allocation5 + $0x78] sm:$0xff]  }
  0x88   :  { %1646 = vmatprep.subr.bf16.mxu1 %v1879_v9  ;;  %v1895_v28 = vld [vmem:[#allocation5 + $0xf0] sm:$0xff]   ;;  %v1899_v34 = vld [vmem:[#allocation5 + $0xf8] sm:$0xff]   ;;  %v1908_v44 = vld [vmem:[#allocation5 + $0x140] sm:$0xff]  }
  0x89   :  { %v1896_v29 = vld [vmem:[#allocation5 + $0x30] sm:$0xff]   ;;  %v1900_v35 = vld [vmem:[#allocation5 + $0x38] sm:$0xff]   ;;  %v1909_v47 = vld [vmem:[#allocation5 + $0x1c0] sm:$0xff]  }
  0x8a   :  { %1625 = vmatpush3.bf16.msra.mxu0 %v1880_v10  ;;  %v1897_v30 = vld [vmem:[#allocation5 + $0xb0] sm:$0xff]   ;;  %v1901_v36 = vld [vmem:[#allocation5 + $0xb8] sm:$0xff]   ;;  %v1910_v50 = vld [vmem:[#allocation5 + $0x100] sm:$0xff]  }
  0x8b   :  { %1647 = vmatpush3.bf16.msra.mxu1 %v1881_v11  ;;  %1626 = vmatprep.subr.bf16.mxu0 %v1882_v12  ;;  %v1902_v38 = vld [vmem:[#allocation2] ss:$16 sps:$4 sm:$0xff]   ;;  %v1906_v40 = vld [vmem:[#allocation2 + $0x4] ss:$16 sps:$4 sm:$0xff]   ;;  %v1912_v56 = vld [vmem:[#allocation5 + $0x148] sm:$0xff]  }
  0x8c   :  { %1648 = vmatprep.subr.bf16.mxu1 %v1883_v13  ;;  %v1904_v39 = vld [vmem:[#allocation2 + $0x20] ss:$16 sps:$4 sm:$0xff]   ;;  %v1907_v41 = vld [vmem:[#allocation2 + $0x24] ss:$16 sps:$4 sm:$0xff]   ;;  %v167_v42 = vrot.slane %v1902_v38, %v2368_v37  ;;  %v174_v45 = vrot.slane %v1906_v40, %v2368_v37  ;;  %v1913_v59 = vld [vmem:[#allocation5 + $0x1c8] sm:$0xff]   ;;  %v2184_v40 = vmov 0.0  }
  0x8d   :  { %v181_v43 = vrot.slane %v1904_v39, %v2368_v37  ;;  %v188_v46 = vrot.slane %v1907_v41, %v2368_v37  ;;  %v1911_v53 = vld [vmem:[#allocation5 + $0x180] sm:$0xff]   ;;  %v1914_v60 = vld [vmem:[#allocation5 + $0x108] sm:$0xff]   ;;  %v1916_v62 = vld [vmem:[#allocation5 + $0x150] sm:$0xff]  }
  0x8e   :  { %1627 = vmatpush3.bf16.msra.mxu0 %v1884_v14  ;;  %v1915_v61 = vld [vmem:[#allocation5 + $0x188] sm:$0xff]   ;;  %v1917_v63 = vld [vmem:[#allocation5 + $0x1d0] sm:$0xff]   ;;  %v1920_v2 = vld [vmem:[#allocation5 + $0x158] sm:$0xff]  }
  0x8f   :  { %1649 = vmatpush3.bf16.msra.mxu1 %v1885_v15  ;;  %1628 = vmatprep.subr.bf16.mxu0 %v1886_v16  ;;  %v190_v48 = vcombine.high %v167_v42, %v181_v43  ;;  %v189_v49 = vcombine.low %v167_v42, %v181_v43  ;;  %v192_v51 = vcombine.high %v174_v45, %v188_v46  ;;  %v1918_v0 = vld [vmem:[#allocation5 + $0x110] sm:$0xff]   ;;  %v1921_v3 = vld [vmem:[#allocation5 + $0x1d8] sm:$0xff]   ;;  %v1924_v6 = vld [vmem:[#allocation5 + $0x160] sm:$0xff]  }
  0x90   :  { %1650 = vmatprep.subr.bf16.mxu1 %v1887_v17  ;;  %v191_v52 = vcombine.low %v174_v45, %v188_v46  ;;  %v1919_v1 = vld [vmem:[#allocation5 + $0x190] sm:$0xff]   ;;  %v1922_v4 = vld [vmem:[#allocation5 + $0x118] sm:$0xff]   ;;  %v1925_v7 = vld [vmem:[#allocation5 + $0x1e0] sm:$0xff]  }
  0x91   :  { %v238_v54 = vpack.c.bf16 %v190_v48, %v190_v48  ;;  %v237_v55 = vpack.c.bf16 %v189_v49, %v189_v49  ;;  %v240_v57 = vpack.c.bf16 %v192_v51, %v192_v51  ;;  %v1923_v5 = vld [vmem:[#allocation5 + $0x198] sm:$0xff]   ;;  %v1926_v8 = vld [vmem:[#allocation5 + $0x120] sm:$0xff]   ;;  %v1928_v10 = vld [vmem:[#allocation5 + $0x168] sm:$0xff]  }
  0x92   :  { %1629 = vmatpush3.bf16.msra.mxu0 %v1888_v18  ;;  %v239_v58 = vpack.c.bf16 %v191_v52, %v191_v52  ;;  %v1927_v9 = vld [vmem:[#allocation5 + $0x1a0] sm:$0xff]   ;;  %v1929_v11 = vld [vmem:[#allocation5 + $0x1e8] sm:$0xff]   ;;  %v1932_v14 = vld [vmem:[#allocation5 + $0x170] sm:$0xff]  }
  0x93   :  { %1651 = vmatpush3.bf16.msra.mxu1 %v1889_v19  ;;  %1630 = vmatprep.subr.bf16.mxu0 %v1890_v20  ;;  %v1930_v12 = vld [vmem:[#allocation5 + $0x128] sm:$0xff]   ;;  %v1933_v15 = vld [vmem:[#allocation5 + $0x1f0] sm:$0xff]   ;;  %v1936_v18 = vld [vmem:[#allocation5 + $0x178] sm:$0xff]  }
  0x94   :  { %1652 = vmatprep.subr.bf16.mxu1 %v1891_v21  ;;  %796 = vmatprep.mubr.bf16.mxu0 %v238_v54  ;;  %v1931_v13 = vld [vmem:[#allocation5 + $0x1a8] sm:$0xff]   ;;  %v1934_v16 = vld [vmem:[#allocation5 + $0x130] sm:$0xff]   ;;  %v1937_v19 = vld [vmem:[#allocation5 + $0x1f8] sm:$0xff]  }
  0x95   :  { %836 = vmatprep.mubr.bf16.mxu1 %v240_v57  ;;  %v1935_v17 = vld [vmem:[#allocation5 + $0x1b0] sm:$0xff]   ;;  %v1938_v20 = vld [vmem:[#allocation5 + $0x138] sm:$0xff]   ;;  %v1946_v39 = vld [vmem:[#allocation7] sm:$0xff]  }
  0x96   :  { %1631 = vmatpush3.bf16.msra.mxu0 %v1892_v22  ;;  %v1939_v21 = vld [vmem:[#allocation5 + $0x1b8] sm:$0xff]   ;;  %v1948_v41 = vld [vmem:[#allocation7 + $0x10] sm:$0xff]   ;;  %v1950_v43 = vld [vmem:[#allocation7 + $0x20] sm:$0xff]  }
  0x97   :  { %1653 = vmatpush3.bf16.msra.mxu1 %v1893_v23  ;;  %1632 = vmatprep.subr.bf16.mxu0 %v1894_v27  ;;  %v1940_v22 = vld [vmem:[#allocation2 + $0x8] ss:$16 sps:$4 sm:$0xff]   ;;  %v1944_v24 = vld [vmem:[#allocation2 + $0xc] ss:$16 sps:$4 sm:$0xff]   ;;  %v1952_v45 = vld [vmem:[#allocation7 + $0x30] sm:$0xff]  }
  0x98   :  { %1654 = vmatprep.subr.bf16.mxu1 %v1895_v28  ;;  %v1942_v23 = vld [vmem:[#allocation2 + $0x28] ss:$16 sps:$4 sm:$0xff]   ;;  %v1945_v25 = vld [vmem:[#allocation2 + $0x2c] ss:$16 sps:$4 sm:$0xff]   ;;  %v203_v26 = vrot.slane %v1940_v22, %v2368_v37  ;;  %v210_v28 = vrot.slane %v1944_v24, %v2368_v37  ;;  %v1956_v49 = vld [vmem:[#allocation8 + $0x10] sm:$0xff]  }
  0x99   :  { %v217_v27 = vrot.slane %v1942_v23, %v2368_v37  ;;  %v1949_v42 = vld [vmem:[#allocation7 + $0x18] sm:$0xff]   ;;  %v1955_v48 = vld [vmem:[#allocation8 + $0x8] sm:$0xff]   ;;  %v1958_v51 = vld [vmem:[#allocation8 + $0x20] sm:$0xff]  }
  0x9a   :  { %1633 = vmatpush3.bf16.msra.mxu0 %v1896_v29  ;;  %v224_v29 = vrot.slane %v1945_v25, %v2368_v37  ;;  %v1947_v37 = vld [vmem:[#allocation7 + $0x8] sm:$0xff]   ;;  %v1953_v46 = vld [vmem:[#allocation7 + $0x38] sm:$0xff]   ;;  %v1966_v22 = vld [vmem:[#allocation10 + $0x20] sm:$0xff]  }
  0x9b   :  { %1655 = vmatpush3.bf16.msra.mxu1 %v1897_v30  ;;  %1634 = vmatprep.subr.bf16.mxu0 %v1898_v33  ;;  %v226_v30 = vcombine.high %v203_v26, %v217_v27  ;;  %v225_v31 = vcombine.low %v203_v26, %v217_v27  ;;  %v1959_v52 = vld [vmem:[#allocation8 + $0x28] sm:$0xff]   ;;  %v1575_v24 = vld [vmem:[%s2462_s4] ss:$0 sm:$0xff] }
  0x9c   :  { %1656 = vmatprep.subr.bf16.mxu1 %v1899_v34  ;;  %v228_v32 = vcombine.high %v210_v28, %v224_v29  ;;  %v227_v33 = vcombine.low %v210_v28, %v224_v29  ;;  %v1967_v23 = vld [vmem:[#allocation10 + $0x28] sm:$0xff]  }
  0x9d   :  { %v242_v34 = vpack.c.bf16 %v226_v30, %v226_v30 }
  0x9e   :  { %1635 = vmatpush3.bf16.msra.mxu0 %v1900_v35  ;;  %v241_v35 = vpack.c.bf16 %v225_v31, %v225_v31  ;;  %v243_v38 = vpack.c.bf16 %v227_v33, %v227_v33  ;;  %v1969_v33 = vld [vmem:[#allocation10 + $0x38] sm:$0xff]  }
  0x9f   :  { %1657 = vmatpush3.bf16.msra.mxu1 %v1901_v36  ;;  %1664 = vmatprep.subr.bf16.mxu0 %v1908_v44  ;;  %v244_v36 = vpack.c.bf16 %v228_v32, %v228_v32  ;;  %v1951_v44 = vld [vmem:[#allocation7 + $0x28] sm:$0xff]   ;;  %v1968_v32 = vld [vmem:[#allocation10 + $0x30] sm:$0xff]  }
  0xa0   :  { %1686 = vmatprep.subr.bf16.mxu1 %v1909_v47  ;;  %v1954_v47 = vld [vmem:[#allocation8] sm:$0xff]  }
  0xa1   :  { %797 = vmatmul.mubr.bf16.vlgmr.msra.gmra.mrb[0].mxu0 %v237_v55  ;;  %v1510_v55 = vld [vmem:[%s2460_s2] ss:$0 sm:$0xff] }
  0xa2   :  { %837 = vmatmul.mubr.bf16.vlgmr.msra.gmra.mrb[0].mxu1 %v239_v58  ;;  %1665 = vmatpush3.bf16.msra.mxu0 %v1910_v50  ;;  %v1957_v50 = vld [vmem:[#allocation8 + $0x18] sm:$0xff]  }
  0xa3   :  { %1687 = vmatpush3.bf16.msra.mxu1 %v1911_v53  ;;  %1666 = vmatprep.subr.bf16.mxu0 %v1912_v56 }
  0xa4   :  { %1688 = vmatprep.subr.bf16.mxu1 %v1913_v59  ;;  %876 = vmatprep.mubr.bf16.mxu0 %v242_v34  ;;  %v1970_v34 = vld [vmem:[#allocation11] sm:$0xff]  }
  0xa5   :  { %916 = vmatprep.mubr.bf16.mxu1 %v244_v36  ;;  %v1972_v36 = vld [vmem:[#allocation11 + $0x10] sm:$0xff]  }
  0xa6   :  { %1667 = vmatpush3.bf16.msra.mxu0 %v1914_v60 }
  0xa7   :  { %1689 = vmatpush3.bf16.msra.mxu1 %v1915_v61  ;;  %1668 = vmatprep.subr.bf16.mxu0 %v1916_v62 }
  0xa8   :  { %1690 = vmatprep.subr.bf16.mxu1 %v1917_v63 }
  0xaa   :  { %1669 = vmatpush3.bf16.msra.mxu0 %v1918_v0 }
  0xab   :  { %1691 = vmatpush3.bf16.msra.mxu1 %v1919_v1  ;;  %1670 = vmatprep.subr.bf16.mxu0 %v1920_v2 }
  0xac   :  { %1692 = vmatprep.subr.bf16.mxu1 %v1921_v3 }
  0xae   :  { %1671 = vmatpush3.bf16.msra.mxu0 %v1922_v4 }
  0xaf   :  { %1693 = vmatpush3.bf16.msra.mxu1 %v1923_v5  ;;  %1672 = vmatprep.subr.bf16.mxu0 %v1924_v6 }
  0xb0   :  { %1694 = vmatprep.subr.bf16.mxu1 %v1925_v7 }
  0xb2   :  { %1673 = vmatpush3.bf16.msra.mxu0 %v1926_v8 }
  0xb3   :  { %1695 = vmatpush3.bf16.msra.mxu1 %v1927_v9  ;;  %1674 = vmatprep.subr.bf16.mxu0 %v1928_v10 }
  0xb4   :  { %1696 = vmatprep.subr.bf16.mxu1 %v1929_v11 }
  0xb6   :  { %1675 = vmatpush3.bf16.msra.mxu0 %v1930_v12 }
  0xb7   :  { %1697 = vmatpush3.bf16.msra.mxu1 %v1931_v13  ;;  %1676 = vmatprep.subr.bf16.mxu0 %v1932_v14 }
  0xb8   :  { %1698 = vmatprep.subr.bf16.mxu1 %v1933_v15 }
  0xba   :  { %1677 = vmatpush3.bf16.msra.mxu0 %v1934_v16  ;;  %v1960_v16 = vld [vmem:[#allocation8 + $0x30] sm:$0xff]  }
  0xbb   :  { %1699 = vmatpush3.bf16.msra.mxu1 %v1935_v17  ;;  %1678 = vmatprep.subr.bf16.mxu0 %v1936_v18  ;;  %v1961_v17 = vld [vmem:[#allocation8 + $0x38] sm:$0xff]   ;;  %v1962_v18 = vld [vmem:[#allocation10] sm:$0xff]  }
  0xbc   :  { %1700 = vmatprep.subr.bf16.mxu1 %v1937_v19  ;;  %v1963_v19 = vld [vmem:[#allocation10 + $0x8] sm:$0xff]  }
  0xbe   :  { %1679 = vmatpush3.bf16.msra.mxu0 %v1938_v20  ;;  %v1964_v20 = vld [vmem:[#allocation10 + $0x10] sm:$0xff]  }
  0xbf   :  { %1701 = vmatpush3.bf16.msra.mxu1 %v1939_v21  ;;  %1753 = vmatprep.subr.bf16.mxu0 %v2184_v40  ;;  %v1965_v21 = vld [vmem:[#allocation10 + $0x18] sm:$0xff]  }
  0xc0   :  { %1773 = vmatprep.subr.bf16.mxu1 %v2184_v40 }
  0xc1   :  { %877 = vmatmul.mubr.bf16.vlgmr.msra.gmra.mrb[4].mxu0 %v241_v35  ;;  %v1971_v35 = vld [vmem:[#allocation11 + $0x8] sm:$0xff]  }
  0xc2   :  { %917 = vmatmul.mubr.bf16.vlgmr.msra.gmra.mrb[4].mxu1 %v243_v38  ;;  %1754 = vmatpush3.bf16.msra.mxu0 %v1946_v39  ;;  %v1973_v38 = vld [vmem:[#allocation11 + $0x18] sm:$0xff]   ;;  %v1974_v39 = vld [vmem:[#allocation11 + $0x20] sm:$0xff]  }
  0xc3   :  { %1755 = vmatprep.subr.bf16.mxu0 %v2184_v40  ;;  %1769 = vmatprep.mubr.msk.bf16.mxu0 %vm2185_vm0, %v2184_v40 }
  0xc4   :  { %1789 = vmatprep.mubr.msk.bf16.mxu1 %vm2185_vm0, %v2184_v40  ;;  %1774 = vmatpush3.bf16.msra.mxu1 %v1954_v47 }
  0xc5   :  { %1775 = vmatprep.subr.bf16.mxu1 %v2184_v40 }
  0xc6   :  { %1756 = vmatpush3.bf16.msra.mxu0 %v1947_v37  ;;  %v1975_v37 = vld [vmem:[#allocation11 + $0x28] sm:$0xff]  }
  0xc7   :  { %1757 = vmatprep.subr.bf16.mxu0 %v2184_v40 }
  0xc8   :  { %1776 = vmatpush3.bf16.msra.mxu1 %v1955_v48 }
  0xc9   :  { %1777 = vmatprep.subr.bf16.mxu1 %v2184_v40 }
  0xca   :  { %1758 = vmatpush3.bf16.msra.mxu0 %v1948_v41  ;;  %v1584_v41 = vld [vmem:[%s2464_s6] ss:$0 sm:$0xff] }
  0xcb   :  { %1759 = vmatprep.subr.bf16.mxu0 %v2184_v40 }
  0xcc   :  { %1778 = vmatpush3.bf16.msra.mxu1 %v1956_v49  ;;  %v1976_v49 = vld [vmem:[#allocation11 + $0x30] sm:$0xff]  }
  0xcd   :  { %1779 = vmatprep.subr.bf16.mxu1 %v2184_v40 }
  0xce   :  { %1760 = vmatpush3.bf16.msra.mxu0 %v1949_v42 }
  0xcf   :  { %1761 = vmatprep.subr.bf16.mxu0 %v2184_v40 }
  0xd0   :  { %1780 = vmatpush3.bf16.msra.mxu1 %v1957_v50  ;;  %v1977_v50 = vld [vmem:[#allocation11 + $0x38] sm:$0xff]  }
  0xd1   :  { %1781 = vmatprep.subr.bf16.mxu1 %v2184_v40 }
  0xd2   :  { %1762 = vmatpush3.bf16.msra.mxu0 %v1950_v43 }
  0xd3   :  { %1763 = vmatprep.subr.bf16.mxu0 %v2184_v40 }
  0xd4   :  { %1782 = vmatpush3.bf16.msra.mxu1 %v1958_v51  ;;  %v1978_v51 = vld [vmem:[#allocation13] sm:$0xff]  }
  0xd5   :  { %1783 = vmatprep.subr.bf16.mxu1 %v2184_v40 }
  0xd6   :  { %1764 = vmatpush3.bf16.msra.mxu0 %v1951_v44 }
  0xd7   :  { %1765 = vmatprep.subr.bf16.mxu0 %v2184_v40 }
  0xd8   :  { %1784 = vmatpush3.bf16.msra.mxu1 %v1959_v52  ;;  %v1979_v52 = vld [vmem:[#allocation13 + $0x8] sm:$0xff]  }
  0xd9   :  { %1785 = vmatprep.subr.bf16.mxu1 %v2184_v40 }
  0xda   :  { %1766 = vmatpush3.bf16.msra.mxu0 %v1952_v45 }
  0xdb   :  { %1767 = vmatprep.subr.bf16.mxu0 %v2184_v40 }
  0xdc   :  { %1786 = vmatpush3.bf16.msra.mxu1 %v1960_v16 }
  0xdd   :  { %1787 = vmatprep.subr.bf16.mxu1 %v2184_v40 }
  0xde   :  { %1768 = vmatpush3.bf16.msra.mxu0 %v1953_v46 }
  0xdf   :  { %1793 = vmatprep.subr.bf16.mxu0 %v2184_v40 }
  0xe0   :  { %1788 = vmatpush3.bf16.msra.mxu1 %v1961_v17 }
  0xe1   :  { %1813 = vmatprep.subr.bf16.mxu1 %v2184_v40 }
 0x174   :  { %v1636_v53 = vpop.f32.mrb[0].mxu0 }
 0x175   :  { %v1658_v54 = vpop.f32.mrb[0].mxu1  ;;  %v1637_v56 = vpop.f32.mrb[1].mxu0 }
 0x176   :  { %v1638_v57 = vadd.f32 %v1637_v56, %v1636_v53  ;;  %v1659_v58 = vpop.f32.mrb[1].mxu1  ;;  %v1639_v59 = vpop.f32.mrb[2].mxu0  ;;  %v1980_v53 = vld [vmem:[#allocation13 + $0x10] sm:$0xff]   ;;  %v1983_v56 = vld [vmem:[#allocation13 + $0x28] sm:$0xff]  }
 0x177   :  { %v1660_v60 = vadd.f32 %v1659_v58, %v1658_v54  ;;  %v1661_v61 = vpop.f32.mrb[2].mxu1  ;;  %v1640_v62 = vpop.f32.mrb[3].mxu0  ;;  %v1981_v54 = vld [vmem:[#allocation13 + $0x18] sm:$0xff]  }
 0x178   :  { %v799_v63 = vadd.f32 %v1638_v57, %v1510_v55  ;;  %v1662_v0 = vpop.f32.mrb[3].mxu1  ;;  %v1982_v55 = vld [vmem:[#allocation13 + $0x20] sm:$0xff]  }
 0x179   :  { %v1593_v57 = vld [vmem:[%s2466_s8] ss:$0 sm:$0xff] }
 0x17a   :  { %v839_v1 = vadd.f32 %v1660_v60, %v799_v63 }
 0x194   :  { %v1680_v2 = vpop.f32.mrb[4].mxu0 }
 0x195   :  { %v1702_v3 = vpop.f32.mrb[4].mxu1  ;;  %v1681_v4 = vpop.f32.mrb[5].mxu0 }
 0x196   :  { %v1682_v5 = vadd.f32 %v1681_v4, %v1680_v2  ;;  %v1703_v6 = vpop.f32.mrb[5].mxu1  ;;  %v1683_v7 = vpop.f32.mrb[6].mxu0  ;;  %v1985_v2 = vld [vmem:[#allocation13 + $0x38] sm:$0xff]  }
 0x197   :  { %v1704_v8 = vadd.f32 %v1703_v6, %v1702_v3  ;;  %v1705_v9 = vpop.f32.mrb[6].mxu1  ;;  %v1684_v10 = vpop.f32.mrb[7].mxu0  ;;  %v1602_v3 = vld [vmem:[%s2468_s10] ss:$0 sm:$0xff] }
 0x198   :  { %v879_v11 = vadd.f32 %v1682_v5, %v839_v1  ;;  %v1706_v12 = vpop.f32.mrb[7].mxu1  ;;  %v1984_v1 = vld [vmem:[#allocation13 + $0x30] sm:$0xff]  }
 0x19a   :  { %v919_v13 = vadd.f32 %v1704_v8, %v879_v11  ;;  %v1611_v11 = vld [vmem:[%s2470_s12] ss:$0 sm:$0xff] }
 0x19c   :  { %v924_v14 = vmax.f32 %v919_v13, 0.0 }
 0x19e   :  { %v925_v15 = vpack.c.bf16 %v924_v14, %v924_v14 }
 0x1a0   :  { %1770 = vmatmul.mubr.bf16.vlgmr.msra.gmra.mrb[8].mxu0 %v925_v15 }
 0x1a1   :  { %1809 = vmatprep.mubr.msk.bf16.mxu0 %vm2185_vm0, %v2184_v40  ;;  %1794 = vmatpush3.bf16.msra.mxu0 %v1962_v18 }
 0x1a2   :  { %1795 = vmatprep.subr.bf16.mxu0 %v2184_v40 }
 0x1a5   :  { %1796 = vmatpush3.bf16.msra.mxu0 %v1963_v19 }
 0x1a6   :  { %1797 = vmatprep.subr.bf16.mxu0 %v2184_v40 }
 0x1a9   :  { %1798 = vmatpush3.bf16.msra.mxu0 %v1964_v20 }
 0x1aa   :  { %1799 = vmatprep.subr.bf16.mxu0 %v2184_v40 }
 0x1ad   :  { %1800 = vmatpush3.bf16.msra.mxu0 %v1965_v21 }
 0x1ae   :  { %1801 = vmatprep.subr.bf16.mxu0 %v2184_v40 }
 0x1b1   :  { %1802 = vmatpush3.bf16.msra.mxu0 %v1966_v22 }
 0x1b2   :  { %1803 = vmatprep.subr.bf16.mxu0 %v2184_v40 }
 0x1b5   :  { %1804 = vmatpush3.bf16.msra.mxu0 %v1967_v23 }
 0x1b6   :  { %1805 = vmatprep.subr.bf16.mxu0 %v2184_v40 }
 0x1b9   :  { %1806 = vmatpush3.bf16.msra.mxu0 %v1968_v32 }
 0x1ba   :  { %1807 = vmatprep.subr.bf16.mxu0 %v2184_v40 }
 0x1bd   :  { %1808 = vmatpush3.bf16.msra.mxu0 %v1969_v33 }
 0x1be   :  { %1833 = vmatprep.subr.bf16.mxu0 %v2184_v40 }
 0x273   :  { %v1031_v25 = vpop.f32.mrb[8].mxu0 }
 0x274   :  { %v1032_v26 = vadd.f32 %v1575_v24, %v1031_v25  ;;  %v1771_v27 = vpop.f32.mrb[9].mxu0 }
 0x275   :  { %v1034_v28 = vpop.f32.mrb[10].mxu0 }
 0x276   :  { %v1037_v29 = vmax.f32 %v1032_v26, 0.0  ;;  %v1772_v30 = vpop.f32.mrb[11].mxu0 }
 0x278   :  { %v1038_v31 = vpack.c.bf16 %v1037_v29, %v1037_v29 }
 0x27a   :  { %1790 = vmatmul.mubr.bf16.vlgmr.msra.gmra.mrb[8].mxu1 %v1038_v31 }
 0x27b   :  { %1829 = vmatprep.mubr.msk.bf16.mxu1 %vm2185_vm0, %v2184_v40  ;;  %1814 = vmatpush3.bf16.msra.mxu1 %v1970_v34 }
 0x27c   :  { %1815 = vmatprep.subr.bf16.mxu1 %v2184_v40 }
 0x27f   :  { %1816 = vmatpush3.bf16.msra.mxu1 %v1971_v35 }
 0x280   :  { %1817 = vmatprep.subr.bf16.mxu1 %v2184_v40 }
 0x283   :  { %1818 = vmatpush3.bf16.msra.mxu1 %v1972_v36 }
 0x284   :  { %1819 = vmatprep.subr.bf16.mxu1 %v2184_v40 }
 0x287   :  { %1820 = vmatpush3.bf16.msra.mxu1 %v1973_v38 }
 0x288   :  { %1821 = vmatprep.subr.bf16.mxu1 %v2184_v40 }
 0x28b   :  { %1822 = vmatpush3.bf16.msra.mxu1 %v1974_v39 }
 0x28c   :  { %1823 = vmatprep.subr.bf16.mxu1 %v2184_v40 }
 0x28f   :  { %1824 = vmatpush3.bf16.msra.mxu1 %v1975_v37 }
 0x290   :  { %1825 = vmatprep.subr.bf16.mxu1 %v2184_v40 }
 0x293   :  { %1826 = vmatpush3.bf16.msra.mxu1 %v1976_v49 }
 0x294   :  { %1827 = vmatprep.subr.bf16.mxu1 %v2184_v40 }
 0x297   :  { %1828 = vmatpush3.bf16.msra.mxu1 %v1977_v50 }
 0x34d   :  { %v1144_v42 = vpop.f32.mrb[8].mxu1 }
 0x34e   :  { %v1145_v43 = vadd.f32 %v1584_v41, %v1144_v42  ;;  %v1791_v44 = vpop.f32.mrb[9].mxu1 }
 0x34f   :  { %v1147_v45 = vpop.f32.mrb[10].mxu1 }
 0x350   :  { %v1150_v46 = vmax.f32 %v1145_v43, 0.0  ;;  %v1792_v47 = vpop.f32.mrb[11].mxu1 }
 0x352   :  { %v1151_v48 = vpack.c.bf16 %v1150_v46, %v1150_v46 }
 0x354   :  { %1810 = vmatmul.mubr.bf16.vlgmr.msra.gmra.mrb[12].mxu0 %v1151_v48 }
 0x355   :  { %1849 = vmatprep.mubr.msk.bf16.mxu0 %vm2185_vm0, %v2184_v40  ;;  %1834 = vmatpush3.bf16.msra.mxu0 %v1978_v51 }
 0x356   :  { %1835 = vmatprep.subr.bf16.mxu0 %v2184_v40 }
 0x359   :  { %1836 = vmatpush3.bf16.msra.mxu0 %v1979_v52 }
 0x35a   :  { %1837 = vmatprep.subr.bf16.mxu0 %v2184_v40 }
 0x35d   :  { %1838 = vmatpush3.bf16.msra.mxu0 %v1980_v53 }
 0x35e   :  { %1839 = vmatprep.subr.bf16.mxu0 %v2184_v40 }
 0x361   :  { %1840 = vmatpush3.bf16.msra.mxu0 %v1981_v54 }
 0x362   :  { %1841 = vmatprep.subr.bf16.mxu0 %v2184_v40 }
 0x365   :  { %1842 = vmatpush3.bf16.msra.mxu0 %v1982_v55 }
 0x366   :  { %1843 = vmatprep.subr.bf16.mxu0 %v2184_v40 }
 0x369   :  { %1844 = vmatpush3.bf16.msra.mxu0 %v1983_v56 }
 0x36a   :  { %1845 = vmatprep.subr.bf16.mxu0 %v2184_v40 }
 0x36d   :  { %1846 = vmatpush3.bf16.msra.mxu0 %v1984_v1 }
 0x36e   :  { %1847 = vmatprep.subr.bf16.mxu0 %v2184_v40 }
 0x371   :  { %1848 = vmatpush3.bf16.msra.mxu0 %v1985_v2 }
 0x427   :  { %v1257_v58 = vpop.f32.mrb[12].mxu0 }
 0x428   :  { %v1258_v59 = vadd.f32 %v1593_v57, %v1257_v58  ;;  %v1811_v60 = vpop.f32.mrb[13].mxu0 }
 0x429   :  { %v1260_v61 = vpop.f32.mrb[14].mxu0 }
 0x42a   :  { %v1263_v62 = vmax.f32 %v1258_v59, 0.0  ;;  %v1812_v63 = vpop.f32.mrb[15].mxu0 }
 0x42c   :  { %v1264_v0 = vpack.c.bf16 %v1263_v62, %v1263_v62 }
 0x42e   :  { %1830 = vmatmul.mubr.bf16.vlgmr.msra.gmra.mrb[12].mxu1 %v1264_v0 }
 0x501   :  { %v1370_v4 = vpop.f32.mrb[12].mxu1 }
 0x502   :  { %v1371_v5 = vadd.f32 %v1602_v3, %v1370_v4  ;;  %v1831_v6 = vpop.f32.mrb[13].mxu1 }
 0x503   :  { %v1373_v7 = vpop.f32.mrb[14].mxu1 }
 0x504   :  { %v1376_v8 = vmax.f32 %v1371_v5, 0.0  ;;  %v1832_v9 = vpop.f32.mrb[15].mxu1 }
 0x506   :  { %v1377_v10 = vpack.c.bf16 %v1376_v8, %v1376_v8 }
 0x508   :  { %1850 = vmatmul.mubr.bf16.vlgmr.msra.gmra.mrb[16].mxu0 %v1377_v10 }
 0x5db   :  { %v1483_v12 = vpop.f32.mrb[16].mxu0 }
 0x5dc   :  { %v1484_v40 = vadd.f32 %v1611_v11, %v1483_v12  ;;  %v1851_v13 = vpop.f32.mrb[17].mxu0 }
 0x5dd   :  { %v1486_v14 = vpop.f32.mrb[18].mxu0 }
 0x5de   :  { %1489 = vst [vmem:[#allocation14] sm:$0xff] %v1484_v40  ;;  %v1852_v15 = vpop.f32.mrb[19].mxu0 }
 0x5df   :  { %1494 = vsyncadd [#allocation4], 96  ;;  %s2186_s10 = smov [#allocation14]  }
 0x5e0   :  { %s1495_s23 = sshll.u32 %s2186_s10, 4  ;;  %s1496_s23 = int_to_ptr.vmem [resolvable:$true] %s1495_s23 }
 0x5e1   :  { %s2140_s16 = scalar_lea.vmem %s1496_s23, 32  ;;  %s2144_s3 = scalar_lea.vmem %s1496_s23, 128 }
 0x5e2   :  { %p2141_p0 = scmp.ne.s32.totalorder %s1496_s23, %s2140_s16  ;;  %p2145_p1 = scmp.lt.s32.totalorder %s1496_s23, %s1496_s23 }
 0x5e3   :  { %p2146_p2 = scmp.lt.s32.totalorder %s2144_s3, %s2140_s16 }
 0x5e5   :  { %p2147_p3 = por %p2146_p2, %p2145_p1 }
 0x5e7   :  { %p2148_p4 = pnand %p2147_p3, %p2141_p0 }
 0x5e9   :  { %2151 = shalt.err (!%p2148_p4)
}
 0x5ea   :  { %s2152_s1 = scalar_lea.hbm %s2471_s13, 32 }
 0x5eb   :  { %p2153_p5 = scmp.ne.s32.totalorder %s2471_s13, %s2152_s1  ;;  %p2156_p6 = scmp.lt.u32.totalorder %s2152_s1, %s2471_s13 }
 0x5ed   :  { %p2158_p7 = pnand %p2156_p6, %p2153_p5 }
 0x5ef   :  { %2161 = shalt.err (!%p2158_p7)
}
 0x5f0   :  { %s2187_s22 = smov 32   ;;  %s2188_s0 = smov 2  }
 0x5f1   :  { %1501 = dma.vmem_to_hbm [thread:$0]  %s1496_s23, 32, %s2471_s13, [#allocation4], %s2187_s22, %s2187_s22, %s2188_s0  }
 0x5f2   :  { %2170 = dma.done.wait [#allocation4], 128  }
 0x5f3   :  { %2171 = vsyncadd [#allocation4], 4294967168 }
 0x5f4   :  { %1505 = vsyncpa [#allocation3], 1 }
 0x5f5   :  { %1506 = vsyncpa [#allocation6], 1 }
 0x5f6   :  { %1507 = vsyncpa [#allocation9], 1 }
 0x5f7   :  { %1508 = vsyncpa [#allocation12], 1 }
 0x5f8   :  { %1509 = vsyncpa [#allocation4], 1 }

</bundles_post_ra>
